<compile_context>
chip_gen: v7x
topology: tpu7x:2x2x1
jax: 0.10.0
libtpu: 0.0.40
codegen_flags: <defaults>
</compile_context>

<pallas_src>
import functools

import jax
import jax.numpy as jnp
from jax.experimental import pallas as pl
from jax.experimental.pallas import tpu as pltpu

EPS = 1e-12
LANE = 128


# ------------------------------ helpers ------------------------------------

def _round_up(x, m):
    return ((x + m - 1) // m) * m


def _row_tiling(n):
    """Padded row count + MXU-friendly row tile dividing it (always >=128)."""
    n_pad = _round_up(max(n, 1), 128)
    if n_pad <= 256:
        return n_pad, n_pad                      # single full-height tile
    n_pad = _round_up(n_pad, 256)                # 256 tiles fill v6e/v7x MXU
    return n_pad, 256


def _pad2d(x, rows, cols, dtype=jnp.float32):
    out = jnp.zeros((rows, cols), dtype)
    return out.at[: x.shape[0], : x.shape[1]].set(x.astype(dtype))


def _gram_accum(y):
    """y^T @ y without materializing a transposed copy in HBM."""
    return jax.lax.dot_general(
        y, y, dimension_numbers=(((0,), (0,)), ((), ())),
        preferred_element_type=jnp.float32)


# ----------------------------- Pallas kernels -------------------------------

def _std_gram_kernel(x_ref, mean_ref, istd_ref, o_ref, g_ref, *, n_valid, tm):
    # Single HBM pass: z-score (stats supplied), mask padded rows, fused Gram.
    r = pl.program_id(0)

    @pl.when(r == 0)
    def _():
        g_ref[...] = jnp.zeros_like(g_ref)

    z = (x_ref[...] - mean_ref[...]) * istd_ref[...]
    row = r * tm + jax.lax.broadcasted_iota(jnp.int32, (tm, 1), 0)
    z = jnp.where(row < n_valid, z, 0.0)         # keep padded rows exactly zero
    o_ref[...] = z
    g_ref[...] += _gram_accum(z)


def standardize_and_gram(x_pad, mean_pad, istd_pad, *, n_valid, tm):
    n_pad, f_pad = x_pad.shape
    kern = functools.partial(_std_gram_kernel, n_valid=n_valid, tm=tm)
    return pl.pallas_call(
        kern,
        out_shape=(jax.ShapeDtypeStruct((n_pad, f_pad), jnp.float32),
                   jax.ShapeDtypeStruct((f_pad, f_pad), jnp.float32)),
        grid=(n_pad // tm,),
        in_specs=[pl.BlockSpec((tm, f_pad), lambda i: (i, 0)),
                  pl.BlockSpec((1, f_pad), lambda i: (0, 0)),
                  pl.BlockSpec((1, f_pad), lambda i: (0, 0))],
        out_specs=(pl.BlockSpec((tm, f_pad), lambda i: (i, 0)),
                   pl.BlockSpec((f_pad, f_pad), lambda i: (0, 0))),
        compiler_params=pltpu.CompilerParams(
            dimension_semantics=("arbitrary",)),   # Gram output is resident
    )(x_pad, mean_pad, istd_pad)


def _project_kernel(x_ref, v_ref, of_ref, ob_ref):
    y = jnp.dot(x_ref[...], v_ref[...], preferred_element_type=jnp.float32)
    of_ref[...] = y                               # f32 embedding
    ob_ref[...] = y.astype(jnp.bfloat16)          # bf16 copy for the next agg


def project(x_pad, v_pad, *, tm):
    n_pad, w = x_pad.shape
    kp = v_pad.shape[1]
    return pl.pallas_call(
        _project_kernel,
        out_shape=(jax.ShapeDtypeStruct((n_pad, kp), jnp.float32),
                   jax.ShapeDtypeStruct((n_pad, kp), jnp.bfloat16)),
        grid=(n_pad // tm,),
        in_specs=[pl.BlockSpec((tm, w), lambda i: (i, 0)),
                  pl.BlockSpec((w, kp), lambda i: (0, 0))],
        out_specs=(pl.BlockSpec((tm, kp), lambda i: (i, 0)),
                   pl.BlockSpec((tm, kp), lambda i: (i, 0))),
        compiler_params=pltpu.CompilerParams(
            dimension_semantics=("parallel",)),
    )(x_pad, v_pad)


def _agg_undir_kernel(a_ref, x_ref, o_ref, g_ref):
    # y = row_l2_norm(A_strip @ X) with X fully resident; fused Gram of y.
    i = pl.program_id(0)

    @pl.when(i == 0)
    def _():
        g_ref[...] = jnp.zeros_like(g_ref)

    y = jnp.dot(a_ref[...], x_ref[...], preferred_element_type=jnp.float32)
    inv = jax.lax.rsqrt(jnp.sum(y * y, axis=-1, keepdims=True) + EPS)
    y = y * inv                                   # padded rows stay exactly 0
    o_ref[...] = y
    g_ref[...] += _gram_accum(y)


def agg_undirected(adj_bf16, x_bf16, *, tm):
    n_pad = adj_bf16.shape[0]
    w = x_bf16.shape[1]
    ce = pl.CostEstimate(
        flops=2 * n_pad * n_pad * w + 2 * n_pad * w * w,
        transcendentals=0,
        bytes_accessed=2 * n_pad * n_pad + 2 * n_pad * w
                       + 4 * n_pad * w + 4 * w * w)
    return pl.pallas_call(
        _agg_undir_kernel,
        out_shape=(jax.ShapeDtypeStruct((n_pad, w), jnp.float32),
                   jax.ShapeDtypeStruct((w, w), jnp.float32)),
        grid=(n_pad // tm,),
        in_specs=[pl.BlockSpec((tm, n_pad), lambda i: (i, 0)),
                  pl.BlockSpec((n_pad, w), lambda i: (0, 0))],   # resident X
        out_specs=(pl.BlockSpec((tm, w), lambda i: (i, 0)),
                   pl.BlockSpec((w, w), lambda i: (0, 0))),
        compiler_params=pltpu.CompilerParams(
            dimension_semantics=("arbitrary",)),
        cost_estimate=ce,
    )(adj_bf16, x_bf16)


def _agg_dir_kernel(a1_ref, a2_ref, x_ref, o_ref, g_ref):
    # Fused directed step: out = [norm(A1 @ X) | norm(A2 @ X)], X resident.
    # The two halves are written as lane-aligned slices (no concatenate) and
    # the Gram of [y1 | y2] is accumulated block-wise.
    i = pl.program_id(0)
    w = x_ref.shape[1]

    @pl.when(i == 0)
    def _():
        g_ref[...] = jnp.zeros_like(g_ref)

    xv = x_ref[...]
    y1 = jnp.dot(a1_ref[...], xv, preferred_element_type=jnp.float32)
    y2 = jnp.dot(a2_ref[...], xv, preferred_element_type=jnp.float32)
    y1 = y1 * jax.lax.rsqrt(jnp.sum(y1 * y1, axis=-1, keepdims=True) + EPS)
    y2 = y2 * jax.lax.rsqrt(jnp.sum(y2 * y2, axis=-1, keepdims=True) + EPS)
    o_ref[:, :w] = y1
    o_ref[:, w:] = y2

    g12 = jax.lax.dot_general(
        y1, y2, dimension_numbers=(((0,), (0,)), ((), ())),
        preferred_element_type=jnp.float32)
    g_ref[:w, :w] += _gram_accum(y1)
    g_ref[:w, w:] += g12
    g_ref[w:, :w] += g12.T
    g_ref[w:, w:] += _gram_accum(y2)


def agg_directed(adj1_bf16, adj2_bf16, x_bf16, *, tm):
    n_pad = adj1_bf16.shape[0]
    w = x_bf16.shape[1]
    ce = pl.CostEstimate(
        flops=4 * n_pad * n_pad * w + 8 * n_pad * w * w,
        transcendentals=0,
        bytes_accessed=4 * n_pad * n_pad + 2 * n_pad * w
                       + 8 * n_pad * w + 16 * w * w)
    return pl.pallas_call(
        _agg_dir_kernel,
        out_shape=(jax.ShapeDtypeStruct((n_pad, 2 * w), jnp.float32),
                   jax.ShapeDtypeStruct((2 * w, 2 * w), jnp.float32)),
        grid=(n_pad // tm,),
        in_specs=[pl.BlockSpec((tm, n_pad), lambda i: (i, 0)),
                  pl.BlockSpec((tm, n_pad), lambda i: (i, 0)),
                  pl.BlockSpec((n_pad, w), lambda i: (0, 0))],   # resident X
        out_specs=(pl.BlockSpec((tm, 2 * w), lambda i: (i, 0)),
                   pl.BlockSpec((2 * w, 2 * w), lambda i: (0, 0))),
        compiler_params=pltpu.CompilerParams(
            dimension_semantics=("arbitrary",)),
        cost_estimate=ce,
    )(adj1_bf16, adj2_bf16, x_bf16)


# --------------------------- model components --------------------------------

def acc_compress_from_gram(x_pad, gram_pad, k, valid_cols, *, tm):
    """ACCCompressor.compress given a pre-fused Gram of the (padded) slab.

    The Gram is restricted to the (possibly non-contiguous) valid columns
    before eigh, so zero-padded columns can never enter the top-k components.
    The W x W eigendecomposition runs in plain JAX; the projection X @ V_k runs
    in Pallas with V_k lane-padded to a multiple of 128.
    TODO(synk): sv_thresholding / theta / rsvd options of ACCCompressor not
    modeled (theta=0.0 => keep all k components).
    """
    w = x_pad.shape[1]
    k = min(k, len(valid_cols))
    idx = jnp.asarray(valid_cols, jnp.int32)
    gram_v = gram_pad[idx][:, idx]                   # tiny (<=512^2) JAX gather
    _, v = jnp.linalg.eigh(gram_v)                   # eigenvalues ascending
    v_top = v[:, ::-1][:, :k]                        # top-k eigenvectors
    kp = _round_up(max(k, 1), LANE)                  # lane-dense projection
    v_full = jnp.zeros((w, k), jnp.float32).at[idx].set(v_top)
    v_pad = jnp.zeros((w, kp), jnp.float32).at[:, :k].set(v_full)
    comp_f32, comp_bf16 = project(x_pad, v_pad, tm=tm)
    return comp_f32, comp_bf16, k


class SwitchACC:
    def __init__(self, *, num_dir_steps, max_dim, min_add_dim,
                 dim_factor_for_directed=2, verbose=False):
        self.num_dir_steps = num_dir_steps
        self.max_dim = max_dim
        self.min_add_dim = min_add_dim
        self.dim_factor_for_directed = dim_factor_for_directed
        self.verbose = verbose
        # NOTE: the module has no learnable parameters; normalizations and the
        # SVD compressor are parameter-free.
        # TODO(synk): initial_feature_standardization / mp_feature_normalization
        # are fixed to column z-score and row-L2 normalization respectively.

    def get_emb_dims(self, num_nodes, num_steps, is_undir):
        if is_undir:
            d = min(max(self.max_dim // (num_steps + 1), self.min_add_dim),
                    num_nodes)
            dims = num_steps * [d]
        else:
            r = min(self.num_dir_steps, num_steps)
            r_undir = num_steps - r
            extra_dims = (self.dim_factor_for_directed - 1) * r
            d = min(max(self.max_dim // (num_steps + extra_dims + 1),
                        self.min_add_dim), num_nodes)
            dims = r * [self.dim_factor_for_directed * d] + r_undir * [d]
        return d, dims

    def forward(self, x, adj_undir, adj_ws2t_t, adj_wt2s, num_steps):
        is_undir = adj_ws2t_t is None and adj_wt2s is None
        n, f = x.shape
        init_dim, emb_dims = self.get_emb_dims(
            num_nodes=n, num_steps=num_steps, is_undir=is_undir)

        n_pad, tm = _row_tiling(n)
        f_pad = _round_up(f, LANE)

        # zero-pad node features to a lane-dense slab; adjacencies to bf16
        x_pad = _pad2d(x, n_pad, f_pad)
        a_u = _pad2d(adj_undir, n_pad, n_pad, jnp.bfloat16)
        a_1 = None if is_undir else _pad2d(adj_ws2t_t, n_pad, n_pad, jnp.bfloat16)
        a_2 = None if is_undir else _pad2d(adj_wt2s, n_pad, n_pad, jnp.bfloat16)

        # column z-score stats: one fused XLA pass, mean-subtracted variance
        # (avoids E[x^2]-mean^2 cancellation); padded stats are zero so padded
        # columns stay exactly zero inside the kernel.
        mean = jnp.mean(x, axis=0, keepdims=True)
        var = jnp.mean((x - mean) ** 2, axis=0, keepdims=True)
        istd = jax.lax.rsqrt(var + EPS)
        mean_p = _pad2d(mean, 1, f_pad)
        istd_p = _pad2d(istd, 1, f_pad)

        xs, gram0 = standardize_and_gram(x_pad, mean_p, istd_p,
                                         n_valid=n, tm=tm)      # base_transform
        valid_cols = list(range(f))
        x_f32, x_bf16, kv = acc_compress_from_gram(
            xs, gram0, init_dim, valid_cols, tm=tm)
        embeddings = [(x_f32, kv)]

        for step, kdim in enumerate(emb_dims):
            if step < self.num_dir_steps and (not is_undir):
                x_agg, gram = agg_directed(a_1, a_2, x_bf16, tm=tm)  # [N, 2W]
                kp = x_bf16.shape[1]
                valid_cols = list(range(kv)) + list(range(kp, kp + kv))
            else:
                x_agg, gram = agg_undirected(a_u, x_bf16, tm=tm)     # [N, W]
                valid_cols = list(range(kv))
            x_f32, x_bf16, kv = acc_compress_from_gram(
                x_agg, gram, kdim, valid_cols, tm=tm)
            embeddings.append((x_f32, kv))

        # strip the row/lane padding and concatenate the valid embeddings
        return jnp.concatenate([e[:n, :w] for e, w in embeddings], axis=1)


# --------------------------------- main ---------------------------------------

if __name__ == "__main__":
    key = jax.random.PRNGKey(0)
    kx, ka, kb, kc = jax.random.split(key, 4)

    N, F = 32, 16                       # 32 nodes, 16 input features
    x = jax.random.normal(kx, (N, F), dtype=jnp.float32)

    def make_adj(k, symmetric=False):
        a = (jax.random.uniform(k, (N, N)) < 0.2).astype(jnp.float32)
        if symmetric:
            a = jnp.maximum(a, a.T)
        a = a + jnp.eye(N, dtype=jnp.float32)
        return a / jnp.sum(a, axis=1, keepdims=True)   # row-stochastic

    adj_undir = make_adj(ka, symmetric=True)
    adj_ws2t_t = make_adj(kb)
    adj_wt2s = make_adj(kc)

    model = SwitchACC(num_dir_steps=1, max_dim=32, min_add_dim=4,
                      dim_factor_for_directed=2)
    out = model.forward(x, adj_undir, adj_ws2t_t, adj_wt2s, num_steps=3)
    out = jax.block_until_ready(out)

    # init_dim d = 6, emb_dims = [12, 6, 6]  ->  concat width 6+12+6+6 = 30
    assert out.shape == (N, 30), out.shape
    assert bool(jnp.all(jnp.isfinite(out)))
    print("KERNEL_OK")
</pallas_src>

<mosaic_0001>
module attributes {stable_mosaic.version = 11 : i64} {
  func.func @_std_gram_kernel(%arg0: i32, %arg1: memref<128x128xf32, #tpu.memory_space<vmem>>, %arg2: memref<1x128xf32, #tpu.memory_space<vmem>>, %arg3: memref<1x128xf32, #tpu.memory_space<vmem>>, %arg4: memref<128x128xf32, #tpu.memory_space<vmem>>, %arg5: memref<128x128xf32, #tpu.memory_space<vmem>>) attributes {dimension_semantics = [#tpu.dimension_semantics<arbitrary>], iteration_bounds = array<i64: 1>, scalar_prefetch = 0 : i64, scratch_operands = 0 : i64, tpu.core_type = #tpu.core_type<tc>, window_params = [{transform_indices = @transform_0, window_bounds = array<i64: 128, 128>}, {pipeline_mode = #tpu.pipeline_mode<synchronous>, transform_indices = @transform_1, window_bounds = array<i64: 1, 128>}, {pipeline_mode = #tpu.pipeline_mode<synchronous>, transform_indices = @transform_2, window_bounds = array<i64: 1, 128>}, {transform_indices = @transform_3, window_bounds = array<i64: 128, 128>}, {pipeline_mode = #tpu.pipeline_mode<synchronous>, transform_indices = @transform_4, window_bounds = array<i64: 128, 128>}]} {
    %c0_i32 = arith.constant 0 : i32
    %0 = arith.cmpi eq, %arg0, %c0_i32 : i32
    %1 = arith.extui %0 : i1 to i32
    %c0_i32_0 = arith.constant 0 : i32
    %2 = arith.cmpi ne, %1, %c0_i32_0 : i32
    scf.if %2 {
      %cst_13 = arith.constant 0.000000e+00 : f32
      %25 = vector.broadcast %cst_13 : f32 to vector<128x128xf32>
      %c0_14 = arith.constant 0 : index
      %c0_15 = arith.constant 0 : index
      %26 = vector.load %arg5[%c0_14, %c0_15] : memref<128x128xf32, #tpu.memory_space<vmem>>, vector<128x128xf32>
      tpu.vector_store %arg5[%c0_14, %c0_15], %25 {strides = array<i32>} : memref<128x128xf32, #tpu.memory_space<vmem>>, vector<128x128xf32>,
    } else {
    }
    %c0 = arith.constant 0 : index
    %c0_1 = arith.constant 0 : index
    %3 = vector.load %arg1[%c0, %c0_1] : memref<128x128xf32, #tpu.memory_space<vmem>>, vector<128x128xf32>
    %c0_2 = arith.constant 0 : index
    %c0_3 = arith.constant 0 : index
    %4 = vector.load %arg2[%c0_2, %c0_3] : memref<1x128xf32, #tpu.memory_space<vmem>>, vector<1x128xf32>
    %5 = vector.broadcast %4 : vector<1x128xf32> to vector<128x128xf32>
    %6 = arith.subf %3, %5 : vector<128x128xf32>
    %c0_4 = arith.constant 0 : index
    %c0_5 = arith.constant 0 : index
    %7 = vector.load %arg3[%c0_4, %c0_5] : memref<1x128xf32, #tpu.memory_space<vmem>>, vector<1x128xf32>
    %8 = vector.broadcast %7 : vector<1x128xf32> to vector<128x128xf32>
    %9 = arith.mulf %6, %8 : vector<128x128xf32>
    %c128_i32 = arith.constant 128 : i32
    %10 = arith.muli %arg0, %c128_i32 : i32
    %11 = tpu.iota {dimensions = array<i32: 0>} : vector<128x1xi32>
    %12 = vector.broadcast %10 : i32 to vector<128x1xi32>
    %13 = arith.addi %12, %11 : vector<128x1xi32>
    %c32_i32 = arith.constant 32 : i32
    %14 = vector.broadcast %c32_i32 : i32 to vector<128x1xi32>
    %15 = arith.cmpi slt, %13, %14 : vector<128x1xi32>
    %cst = arith.constant 0.000000e+00 : f32
    %16 = vector.shape_cast %15 : vector<128x1xi1> to vector<128x1xi1>
    %17 = vector.broadcast %16 : vector<128x1xi1> to vector<128x128xi1>
    %18 = vector.broadcast %cst : f32 to vector<128x128xf32>
    %19 = arith.select %17, %9, %18 : vector<128x128xi1>, vector<128x128xf32>
    %c0_6 = arith.constant 0 : index
    %c0_7 = arith.constant 0 : index
    %20 = vector.load %arg4[%c0_6, %c0_7] : memref<128x128xf32, #tpu.memory_space<vmem>>, vector<128x128xf32>
    tpu.vector_store %arg4[%c0_6, %c0_7], %19 {strides = array<i32>} : memref<128x128xf32, #tpu.memory_space<vmem>>, vector<128x128xf32>,
    %c0_8 = arith.constant 0 : index
    %c0_9 = arith.constant 0 : index
    %21 = vector.load %arg5[%c0_8, %c0_9] : memref<128x128xf32, #tpu.memory_space<vmem>>, vector<128x128xf32>
    %cst_10 = arith.constant dense<0.000000e+00> : vector<128x128xf32>
    %22 = tpu.matmul %19, %19, %cst_10 {dimension_numbers = #tpu.dot_dimension_numbers<[0], [0], [1], [1], [0, 1, 1, 1], [], []>} : vector<128x128xf32>, vector<128x128xf32>, vector<128x128xf32> -> vector<128x128xf32>
    %23 = arith.addf %21, %22 : vector<128x128xf32>
    %c0_11 = arith.constant 0 : index
    %c0_12 = arith.constant 0 : index
    %24 = vector.load %arg5[%c0_11, %c0_12] : memref<128x128xf32, #tpu.memory_space<vmem>>, vector<128x128xf32>
    tpu.vector_store %arg5[%c0_11, %c0_12], %23 {strides = array<i32>} : memref<128x128xf32, #tpu.memory_space<vmem>>, vector<128x128xf32>,
    return
  }
  func.func @transform_0(%arg0: i32) -> (i32, i32) {
    %c0_i32 = arith.constant 0 : i32
    %c0_i32_0 = arith.constant 0 : i32
    return %arg0, %c0_i32 : i32, i32
  }
  func.func @transform_1(%arg0: i32) -> (i32, i32) {
    %c0_i32 = arith.constant 0 : i32
    %c0_i32_0 = arith.constant 0 : i32
    %c0_i32_1 = arith.constant 0 : i32
    return %c0_i32, %c0_i32_0 : i32, i32
  }
  func.func @transform_2(%arg0: i32) -> (i32, i32) {
    %c0_i32 = arith.constant 0 : i32
    %c0_i32_0 = arith.constant 0 : i32
    %c0_i32_1 = arith.constant 0 : i32
    return %c0_i32, %c0_i32_0 : i32, i32
  }
  func.func @transform_3(%arg0: i32) -> (i32, i32) {
    %c0_i32 = arith.constant 0 : i32
    %c0_i32_0 = arith.constant 0 : i32
    return %arg0, %c0_i32 : i32, i32
  }
  func.func @transform_4(%arg0: i32) -> (i32, i32) {
    %c0_i32 = arith.constant 0 : i32
    %c0_i32_0 = arith.constant 0 : i32
    %c0_i32_1 = arith.constant 0 : i32
    return %c0_i32, %c0_i32_0 : i32, i32
  }
}

</mosaic_0001>

<bundles_post_ra>
// kernel: tpu_custom_call.1
= control target key start
LH: loop header
LB: loop body
LE: loop exit
PB: predicated region body
PF: predicated region fallthrough
CT: control target
= control target key end

     0   :  { %10 = vsyncpa [#allocation3], 0  ;;  %s713_s0 = inlined_call_operand.hbm [shape: f32[128,128], index: 0, kind: input, shape index: {}]   ;;  %s714_s1 = inlined_call_operand.vmem [shape: f32[1,128], index: 1, kind: input, shape index: {}]   ;;  %s715_s2 = inlined_call_operand.vmem [shape: f32[1,128], index: 2, kind: input, shape index: {}]   ;;  %s716_s3 = inlined_call_operand.hbm [shape: f32[128,128], index: 3, kind: output, shape index: {0}]   ;;  %s717_s4 = inlined_call_operand.hbm [shape: f32[128,128], index: 4, kind: output, shape index: {1}]  }
   0x1   :  { %11 = vsyncpa [#allocation4], 0 }
   0x2   :  { %12 = vsyncpa [#allocation7], 0  ;;  %s631_s15 = smov [#allocation2]   ;;  %s559_s19 = scalar_lea.hbm %s713_s0, 2048 }
   0x3   :  { %s18_s16 = sshll.u32 %s631_s15, 4  ;;  %p560_p0 = scmp.ne.s32.totalorder %s713_s0, %s559_s19  ;;  %s19_s16 = int_to_ptr.vmem [resolvable:$true] %s18_s16 }
   0x4   :  { %p563_p1 = scmp.lt.u32.totalorder %s559_s19, %s713_s0 }
   0x6   :  { %p565_p2 = pnand %p563_p1, %p560_p0 }
   0x8   :  { %568 = shalt.err (!%p565_p2)
}
   0x9   :  { %s569_s24 = scalar_lea.vmem %s19_s16, 2048  ;;  %p574_p4 = scmp.lt.s32.totalorder %s19_s16, %s19_s16 }
   0xa   :  { %p570_p3 = scmp.ne.s32.totalorder %s19_s16, %s569_s24  ;;  %p575_p5 = scmp.lt.s32.totalorder %s569_s24, %s569_s24 }
   0xc   :  { %p576_p6 = por %p575_p5, %p574_p4 }
   0xe   :  { %p577_p7 = pnand %p576_p6, %p570_p3 }
  0x10   :  { %580 = shalt.err (!%p577_p7)
}
  0x11   :  { %s632_s25 = smov 128   ;;  %s633_s26 = smov 8  }
  0x12   :  { %24 = dma.hbm_to_vmem [thread:$0]  %s713_s0, 2048, %s19_s16, [#allocation3], %s632_s25, %s632_s25, %s633_s26  }
  0x13   :  { %625 = dma.done.wait [#allocation3], 2048  }
  0x14   :  { %626 = vsyncadd [#allocation3], 4294965248  ;;  %v52_v0 = vld [vmem:[#allocation2] sm:$0xff]  ;;  %v53_v4 = vld [vmem:[#allocation2 + $0x8] sm:$0xff]  ;;  %v634_v16 = vmov 0.0   ;;  %s635_s0 = smov [#allocation5]  }
  0x15   :  { %v487_v1 = vld [vmem:[%s714_s1] ss:$0 sm:$0xff]  ;;  %v54_v5 = vld [vmem:[#allocation2 + $0x10] sm:$0xff]  ;;  %v55_v6 = vld [vmem:[#allocation2 + $0x18] sm:$0xff]  ;;  %217 = vst [vmem:[#allocation5 + $0x20] sm:$0xff] %v634_v16  ;;  %s459_s1 = sshll.u32 %s635_s0, 4  ;;  %s460_s1 = int_to_ptr.vmem [resolvable:$true] %s459_s1 }
  0x16   :  { %v488_v2 = vld [vmem:[%s715_s2] ss:$0 sm:$0xff]  ;;  %v75_v3 = vsub.f32 %v52_v0, %v487_v1  ;;  %v76_v7 = vsub.f32 %v53_v4, %v487_v1  ;;  %v77_v8 = vsub.f32 %v54_v5, %v487_v1  ;;  %v78_v9 = vsub.f32 %v55_v6, %v487_v1  ;;  %218 = vst [vmem:[#allocation5 + $0x28] sm:$0xff] %v634_v16  ;;  %s581_s2 = scalar_lea.vmem %s460_s1, 2048  ;;  %p586_p9 = scmp.lt.s32.totalorder %s460_s1, %s460_s1 }
  0x17   :  { %219 = vst [vmem:[#allocation5 + $0x30] sm:$0xff] %v634_v16  ;;  %220 = vst [vmem:[#allocation5 + $0x38] sm:$0xff] %v634_v16  ;;  %p582_p8 = scmp.ne.s32.totalorder %s460_s1, %s581_s2  ;;  %p587_p10 = scmp.lt.s32.totalorder %s581_s2, %s581_s2 }
  0x18   :  { %v98_v10 = vmul.f32 %v488_v2, %v75_v3  ;;  %v99_v11 = vmul.f32 %v488_v2, %v76_v7  ;;  %v100_v12 = vmul.f32 %v488_v2, %v77_v8  ;;  %v101_v13 = vmul.f32 %v488_v2, %v78_v9  ;;  %221 = vst [vmem:[#allocation5 + $0x40] sm:$0xff] %v634_v16 }
  0x19   :  { %222 = vst [vmem:[#allocation5 + $0x48] sm:$0xff] %v634_v16  ;;  %223 = vst [vmem:[#allocation5 + $0x50] sm:$0xff] %v634_v16  ;;  %p588_p11 = por %p587_p10, %p586_p9 }
  0x1a   :  { %245 = vxpose.xlu0.b32.start [1/4] (short) %v98_v10, 128  ;;  %213 = vst [vmem:[#allocation5] sm:$0xff] %v98_v10  ;;  %214 = vst [vmem:[#allocation5 + $0x8] sm:$0xff] %v99_v11  ;;  %v541_v14 = vpack.c.bf16 %v99_v11, %v98_v10  ;;  %v545_v15 = vpack.c.bf16 %v101_v13, %v100_v12 }
  0x1b   :  { %215 = vst [vmem:[#allocation5 + $0x10] sm:$0xff] %v100_v12  ;;  %216 = vst [vmem:[#allocation5 + $0x18] sm:$0xff] %v101_v13  ;;  %p589_p12 = pnand %p588_p11, %p582_p8 }
  0x1c   :  { %542 = vmatprep.subr.bf16.mxu0 %v541_v14  ;;  %549 = vmatprep.subr.bf16.mxu1 %v541_v14  ;;  %224 = vst [vmem:[#allocation5 + $0x58] sm:$0xff] %v634_v16  ;;  %225 = vst [vmem:[#allocation5 + $0x60] sm:$0xff] %v634_v16 }
  0x1d   :  { %544 = vmatpush3.bf16.msra.mxu0 %v541_v14  ;;  %551 = vmatpush3.bf16.msra.mxu1 %v541_v14  ;;  %226 = vst [vmem:[#allocation5 + $0x68] sm:$0xff] %v634_v16  ;;  %227 = vst [vmem:[#allocation5 + $0x70] sm:$0xff] %v634_v16 }
  0x1e   :  { %246 = vxpose.xlu0.b32.cont [2/4] (short) %v99_v11, 128  ;;  %546 = vmatprep.subr.bf16.mxu0 %v545_v15  ;;  %228 = vst [vmem:[#allocation5 + $0x78] sm:$0xff] %v634_v16 }
  0x1f   :  { %550 = vmatprep.subr.bf16.mxu1 %v545_v15 }
  0x21   :  { %548 = vmatpush3.bf16.msra.mxu0 %v545_v15  ;;  %552 = vmatpush3.bf16.msra.mxu1 %v545_v15 }
  0x22   :  { %247 = vxpose.xlu0.b32.cont [3/4] (short) %v100_v12, 128 }
  0x26   :  { %248 = vxpose.xlu0.b32.end [4/4] (short) %v101_v13, 128 }
  0x9a   :  { %v261_v17 = vpop.trf.xlu0 }
  0x9b   :  { %517 = vmatprep.mubr.f32.mxu0 %v261_v17 }
  0x9e   :  { %v262_v18 = vpop.trf.xlu0 }
  0x9f   :  { %518 = vmatmul.mubr.f32.vlgmr.msra.gmra.mrb[0].mxu0 %v262_v18 }
  0xa2   :  { %v263_v19 = vpop.trf.xlu0 }
  0xa3   :  { %520 = vmatprep.mubr.f32.mxu0 %v263_v19 }
  0xa6   :  { %v264_v20 = vpop.trf.xlu0 }
  0xa7   :  { %521 = vmatmul.mubr.f32.gmra.mrb[2].mxu0 %v264_v20 }
  0xaa   :  { %v265_v21 = vpop.trf.xlu0 }
  0xab   :  { %523 = vmatprep.mubr.f32.mxu0 %v265_v21 }
  0xae   :  { %v266_v22 = vpop.trf.xlu0 }
  0xaf   :  { %524 = vmatmul.mubr.f32.gmra.mrb[4].mxu0 %v266_v22 }
  0xb2   :  { %v267_v23 = vpop.trf.xlu0 }
  0xb3   :  { %526 = vmatprep.mubr.f32.mxu0 %v267_v23 }
  0xb6   :  { %v268_v24 = vpop.trf.xlu0 }
  0xb7   :  { %527 = vmatmul.mubr.f32.gmra.mrb[6].mxu0 %v268_v24 }
  0xba   :  { %v269_v25 = vpop.trf.xlu0 }
  0xbb   :  { %529 = vmatprep.mubr.f32.mxu1 %v269_v25 }
  0xbe   :  { %v270_v26 = vpop.trf.xlu0 }
  0xbf   :  { %530 = vmatmul.mubr.f32.vlgmr.msra.gmra.mrb[0].mxu1 %v270_v26 }
  0xc2   :  { %v271_v27 = vpop.trf.xlu0 }
  0xc3   :  { %532 = vmatprep.mubr.f32.mxu1 %v271_v27 }
  0xc6   :  { %v272_v28 = vpop.trf.xlu0 }
  0xc7   :  { %533 = vmatmul.mubr.f32.gmra.mrb[2].mxu1 %v272_v28 }
  0xca   :  { %v273_v29 = vpop.trf.xlu0 }
  0xcb   :  { %535 = vmatprep.mubr.f32.mxu1 %v273_v29 }
  0xce   :  { %v274_v30 = vpop.trf.xlu0 }
  0xcf   :  { %536 = vmatmul.mubr.f32.gmra.mrb[4].mxu1 %v274_v30 }
  0xd2   :  { %v275_v31 = vpop.trf.xlu0 }
  0xd3   :  { %538 = vmatprep.mubr.f32.mxu1 %v275_v31 }
  0xd6   :  { %v276_v32 = vpop.trf.xlu0 }
  0xd7   :  { %539 = vmatmul.mubr.f32.gmra.mrb[6].mxu1 %v276_v32 }
  0xd8   :  { %592 = shalt.err (!%p589_p12)
}
  0xd9   :  { %s593_s9 = scalar_lea.hbm %s716_s3, 2048 }
  0xda   :  { %p594_p13 = scmp.ne.s32.totalorder %s716_s3, %s593_s9  ;;  %p597_p0 = scmp.lt.u32.totalorder %s593_s9, %s716_s3 }
  0xdc   :  { %p599_p1 = pnand %p597_p0, %p594_p13 }
  0xde   :  { %602 = shalt.err (!%p599_p1)
}
  0xdf   :  { %465 = dma.vmem_to_hbm [thread:$0]  %s460_s1, 2048, %s716_s3, [#allocation4], %s632_s25, %s632_s25, %s633_s26  }
  0xe0   :  { %s636_s3 = smov [#allocation6]  }
  0xe1   :  { %s471_s16 = sshll.u32 %s636_s3, 4  ;;  %s472_s16 = int_to_ptr.vmem [resolvable:$true] %s471_s16 }
  0xe2   :  { %s603_s17 = scalar_lea.vmem %s472_s16, 2048  ;;  %p608_p3 = scmp.lt.s32.totalorder %s472_s16, %s472_s16 }
  0xe3   :  { %p604_p2 = scmp.ne.s32.totalorder %s472_s16, %s603_s17  ;;  %p609_p4 = scmp.lt.s32.totalorder %s603_s17, %s603_s17 }
  0xe5   :  { %p610_p5 = por %p609_p4, %p608_p3 }
  0xe7   :  { %p611_p6 = pnand %p610_p5, %p604_p2 }
 0x172   :  { %v519_v33 = vpop.f32.mrb[0].mxu0 }
 0x173   :  { %v343_v34 = vpop.f32.mrb[1].mxu0  ;;  %439 = vst [vmem:[#allocation6 + $0x8] sm:$0xff] %v519_v33 }
 0x174   :  { %438 = vst [vmem:[#allocation6] sm:$0xff] %v343_v34 }
 0x17a   :  { %v522_v35 = vpop.f32.mrb[2].mxu0 }
 0x17b   :  { %v353_v36 = vpop.f32.mrb[3].mxu0  ;;  %441 = vst [vmem:[#allocation6 + $0x18] sm:$0xff] %v522_v35 }
 0x17c   :  { %440 = vst [vmem:[#allocation6 + $0x10] sm:$0xff] %v353_v36 }
 0x182   :  { %v525_v37 = vpop.f32.mrb[4].mxu0 }
 0x183   :  { %v363_v38 = vpop.f32.mrb[5].mxu0  ;;  %443 = vst [vmem:[#allocation6 + $0x28] sm:$0xff] %v525_v37 }
 0x184   :  { %442 = vst [vmem:[#allocation6 + $0x20] sm:$0xff] %v363_v38 }
 0x18a   :  { %v528_v39 = vpop.f32.mrb[6].mxu0 }
 0x18b   :  { %v373_v40 = vpop.f32.mrb[7].mxu0  ;;  %445 = vst [vmem:[#allocation6 + $0x38] sm:$0xff] %v528_v39 }
 0x18c   :  { %444 = vst [vmem:[#allocation6 + $0x30] sm:$0xff] %v373_v40 }
 0x192   :  { %v531_v41 = vpop.f32.mrb[0].mxu1 }
 0x193   :  { %v383_v42 = vpop.f32.mrb[1].mxu1  ;;  %447 = vst [vmem:[#allocation6 + $0x48] sm:$0xff] %v531_v41 }
 0x194   :  { %446 = vst [vmem:[#allocation6 + $0x40] sm:$0xff] %v383_v42 }
 0x19a   :  { %v534_v43 = vpop.f32.mrb[2].mxu1 }
 0x19b   :  { %v393_v44 = vpop.f32.mrb[3].mxu1  ;;  %449 = vst [vmem:[#allocation6 + $0x58] sm:$0xff] %v534_v43 }
 0x19c   :  { %448 = vst [vmem:[#allocation6 + $0x50] sm:$0xff] %v393_v44 }
 0x1a2   :  { %v537_v45 = vpop.f32.mrb[4].mxu1 }
 0x1a3   :  { %v403_v46 = vpop.f32.mrb[5].mxu1  ;;  %451 = vst [vmem:[#allocation6 + $0x68] sm:$0xff] %v537_v45 }
 0x1a4   :  { %450 = vst [vmem:[#allocation6 + $0x60] sm:$0xff] %v403_v46 }
 0x1aa   :  { %v540_v47 = vpop.f32.mrb[6].mxu1 }
 0x1ab   :  { %v413_v48 = vpop.f32.mrb[7].mxu1  ;;  %453 = vst [vmem:[#allocation6 + $0x78] sm:$0xff] %v540_v47 }
 0x1ac   :  { %452 = vst [vmem:[#allocation6 + $0x70] sm:$0xff] %v413_v48 }
 0x1ad   :  { %614 = shalt.err (!%p611_p6)
}
 0x1ae   :  { %s615_s20 = scalar_lea.hbm %s717_s4, 2048 }
 0x1af   :  { %p616_p7 = scmp.ne.s32.totalorder %s717_s4, %s615_s20  ;;  %p619_p8 = scmp.lt.u32.totalorder %s615_s20, %s717_s4 }
 0x1b1   :  { %p621_p9 = pnand %p619_p8, %p616_p7 }
 0x1b3   :  { %624 = shalt.err (!%p621_p9)
}
 0x1b4   :  { %477 = dma.vmem_to_hbm [thread:$0]  %s472_s16, 2048, %s717_s4, [#allocation7], %s632_s25, %s632_s25, %s633_s26  }
 0x1b5   :  { %627 = dma.done.wait [#allocation4], 2048  }
 0x1b6   :  { %628 = vsyncadd [#allocation4], 4294965248 }
 0x1b7   :  { %629 = dma.done.wait [#allocation7], 2048  }
 0x1b8   :  { %630 = vsyncadd [#allocation7], 4294965248 }
 0x1b9   :  { %484 = vsyncpa [#allocation3], 1 }
 0x1ba   :  { %485 = vsyncpa [#allocation4], 1 }
 0x1bb   :  { %486 = vsyncpa [#allocation7], 1 }

</bundles_post_ra>
